<compile_context>
chip_gen: v6e
topology: v6e:2x2x1
jax: 0.10.0
libtpu: 0.0.40
codegen_flags: <defaults>
</compile_context>

<pallas_src>
import functools
from math import sqrt

import jax
import jax.numpy as jnp
import numpy as np
from jax import lax
from jax.experimental import pallas as pl
from jax.experimental.pallas import tpu as pltpu

EDGES = [(1, 0), (2, 0), (2, 1), (3, 0), (3, 1), (3, 2), (4, 0), (5, 0), (6, 0),
         (6, 4), (6, 5), (7, 0), (7, 1), (7, 2), (7, 3), (8, 0), (8, 2), (9, 2),
         (10, 0), (10, 4), (10, 5), (11, 0), (12, 0), (12, 3), (13, 0), (13, 1),
         (13, 2), (13, 3), (16, 5), (16, 6), (17, 0), (17, 1), (19, 0), (19, 1),
         (21, 0), (21, 1), (25, 23), (25, 24), (27, 2), (27, 23), (27, 24),
         (28, 2), (29, 23), (29, 26), (30, 1), (30, 8), (31, 0), (31, 24),
         (31, 25), (31, 28), (32, 2), (32, 8), (32, 14), (32, 15), (32, 18),
         (32, 20), (32, 22), (32, 23), (32, 29), (32, 30), (32, 31), (33, 8),
         (33, 9), (33, 13), (33, 14), (33, 15), (33, 18), (33, 19), (33, 20),
         (33, 22), (33, 23), (33, 26), (33, 27), (33, 28), (33, 29), (33, 30),
         (33, 31), (33, 32)]

NUM_NODES = 34          # karate club graph
FEATURE_DIM = 16
D_K = 8
ROWS_PAD = 40           # sublane-aligned row padding: ceil(34 / 8) * 8
N_PAD = 128             # lane-dense column padding (multiple of 128)


def graph_attention_kernel(x_ref, wk_ref, bk_ref, wq_ref, bq_ref, mask_ref,
                           o_ref):
    # Q for every padded column (W_Q / b_Q already carry the 1/d_k scale).
    q = jnp.dot(x_ref[...], wq_ref[...],
                preferred_element_type=jnp.float32) + bq_ref[...]     # [N_PAD, d_k]
    # K only for the rows kept in the output (static sublane-aligned slice).
    k = jnp.dot(x_ref[:ROWS_PAD, :], wk_ref[...],
                preferred_element_type=jnp.float32) + bk_ref[...]     # [ROWS_PAD, d_k]
    # score[u, v] = <K[u], Q[v]> -- contract last axes, no explicit transpose.
    s = lax.dot_general(k, q,
                        dimension_numbers=(((1,), (1,)), ((), ())),
                        preferred_element_type=jnp.float32)           # [ROWS_PAD, N_PAD]
    # A[u, v] = exp(score) only where an edge (u, v) exists, else 0.
    a = jnp.exp(s) * mask_ref[...].astype(jnp.float32)
    # Row normalize, guarding rows with zero sum; exact reciprocal (approx=False).
    row_sums = jnp.sum(a, axis=1, keepdims=True)
    denom = jnp.where(row_sums == 0.0, jnp.float32(1.0), row_sums)
    o_ref[...] = a * pl.reciprocal(denom)


def prepare_params(w_k, b_k, w_q, b_q, d_k):
    """Fold the 1/d_k score scale into W_Q / b_Q (exact for power-of-two d_k)."""
    inv = jnp.float32(1.0 / float(d_k))
    return (w_k.astype(jnp.float32),
            b_k.astype(jnp.float32).reshape(1, -1),
            w_q.astype(jnp.float32) * inv,
            b_q.astype(jnp.float32).reshape(1, -1) * inv)


def build_edge_mask(edges, rows_pad, n_pad):
    """Dense [rows_pad, n_pad] 0/1 edge mask in bf16 (exact), built once."""
    m = np.zeros((rows_pad, n_pad), dtype=np.float32)
    u = np.array([e[0] for e in edges], dtype=np.int32)
    v = np.array([e[1] for e in edges], dtype=np.int32)
    m[u, v] = 1.0
    return jnp.asarray(m, dtype=jnp.bfloat16)


def pad_nodes(x, n_pad):
    """Zero-pad node features to n_pad rows (padded rows MUST be zero so
    exp(score) of garbage never reaches the masked multiply)."""
    return jnp.zeros((n_pad, x.shape[1]), jnp.float32).at[:x.shape[0]].set(
        x.astype(jnp.float32))


@jax.jit
def graph_attention_padded(x_p, w_k, b_k, w_q, b_q, mask):
    """x_p: [N_PAD, F] zero-padded features; returns padded [ROWS_PAD, N_PAD]
    attention.  No pad/slice ops inside the per-call path."""
    return pl.pallas_call(
        graph_attention_kernel,
        out_shape=jax.ShapeDtypeStruct((ROWS_PAD, N_PAD), jnp.float32),
        in_specs=[pl.BlockSpec(memory_space=pltpu.MemorySpace.VMEM)] * 6,
        out_specs=pl.BlockSpec(memory_space=pltpu.MemorySpace.VMEM),
    )(x_p, w_k, b_k, w_q, b_q, mask)


def reference(x, w_k, b_k, w_q, b_q, edges, d_k):
    """Pure-JAX reference replicating the PyTorch forward."""
    n = x.shape[0]
    kx = x @ w_k + b_k
    qx = x @ w_q + b_q
    s = (kx @ qx.T) / d_k
    mask = np.zeros((n, n), dtype=np.float32)
    for uu, vv in edges:
        mask[uu, vv] = 1.0
    a = jnp.exp(s) * jnp.asarray(mask)
    rs = a.sum(axis=1, keepdims=True)
    return a / jnp.where(rs == 0.0, 1.0, rs)


if __name__ == "__main__":
    key = jax.random.PRNGKey(0)
    kx, kwk, kbk, kwq, kbq = jax.random.split(key, 5)

    # Node features
    x = jax.random.normal(kx, (NUM_NODES, FEATURE_DIM), dtype=jnp.float32)

    # Deterministic Linear params (uniform in +/- 1/sqrt(fan_in), like torch default).
    bound = 1.0 / sqrt(FEATURE_DIM)
    w_k = jax.random.uniform(kwk, (FEATURE_DIM, D_K), minval=-bound, maxval=bound)
    b_k = jax.random.uniform(kbk, (D_K,), minval=-bound, maxval=bound)
    w_q = jax.random.uniform(kwq, (FEATURE_DIM, D_K), minval=-bound, maxval=bound)
    b_q = jax.random.uniform(kbq, (D_K,), minval=-bound, maxval=bound)

    # One-time prep (hoisted out of the per-call path): scale fold, mask, pad.
    w_k_p, b_k_p, w_q_p, b_q_p = prepare_params(w_k, b_k, w_q, b_q, D_K)
    mask = build_edge_mask(EDGES, ROWS_PAD, N_PAD)
    x_p = pad_nodes(x, N_PAD)

    a_padded = graph_attention_padded(x_p, w_k_p, b_k_p, w_q_p, b_q_p, mask)
    a_padded = jax.block_until_ready(a_padded)

    # Slice back to the logical graph size only once, for the correctness check.
    a_kernel = np.asarray(a_padded)[:NUM_NODES, :NUM_NODES]
    a_ref = np.asarray(reference(x, w_k, b_k, w_q, b_q, EDGES, D_K))
    assert a_kernel.shape == (NUM_NODES, NUM_NODES)
    assert np.allclose(a_kernel, a_ref, atol=1e-5, rtol=1e-5)
    # Padded rows/columns must be exactly zero.
    assert np.all(np.asarray(a_padded)[NUM_NODES:, :] == 0.0)
    assert np.all(np.asarray(a_padded)[:, NUM_NODES:] == 0.0)

    # TODO(synk): when batching graphs / heads / stacked GNN layers, add a
    # leading grid axis with dimension_semantics=("parallel", ...) and widen
    # the fused projection to a multiple of 128/256 lanes so the MXU and both
    # v7x TensorCores are actually occupied.
    print("KERNEL_OK")
</pallas_src>

<mosaic_0001>
module attributes {stable_mosaic.version = 11 : i64} {
  func.func @graph_attention_kernel(%arg0: memref<128x16xf32, #tpu.memory_space<vmem>>, %arg1: memref<16x8xf32, #tpu.memory_space<vmem>>, %arg2: memref<1x8xf32, #tpu.memory_space<vmem>>, %arg3: memref<16x8xf32, #tpu.memory_space<vmem>>, %arg4: memref<1x8xf32, #tpu.memory_space<vmem>>, %arg5: memref<40x128xbf16, #tpu.memory_space<vmem>>, %arg6: memref<40x128xf32, #tpu.memory_space<vmem>>) attributes {dimension_semantics = [], scalar_prefetch = 0 : i64, scratch_operands = 0 : i64, tpu.core_type = #tpu.core_type<tc>} {
    %c0 = arith.constant 0 : index
    %c0_0 = arith.constant 0 : index
    %0 = vector.load %arg0[%c0, %c0_0] : memref<128x16xf32, #tpu.memory_space<vmem>>, vector<128x16xf32>
    %c0_1 = arith.constant 0 : index
    %c0_2 = arith.constant 0 : index
    %1 = vector.load %arg3[%c0_1, %c0_2] : memref<16x8xf32, #tpu.memory_space<vmem>>, vector<16x8xf32>
    %cst = arith.constant dense<0.000000e+00> : vector<128x8xf32>
    %2 = tpu.matmul %0, %1, %cst {dimension_numbers = #tpu.dot_dimension_numbers<[1], [0], [0], [1], [0, 0, 1, 1], [], []>} : vector<128x16xf32>, vector<16x8xf32>, vector<128x8xf32> -> vector<128x8xf32>
    %c0_3 = arith.constant 0 : index
    %c0_4 = arith.constant 0 : index
    %3 = vector.load %arg4[%c0_3, %c0_4] : memref<1x8xf32, #tpu.memory_space<vmem>>, vector<1x8xf32>
    %4 = vector.broadcast %3 : vector<1x8xf32> to vector<128x8xf32>
    %5 = arith.addf %2, %4 : vector<128x8xf32>
    %c0_5 = arith.constant 0 : index
    %c0_6 = arith.constant 0 : index
    %6 = vector.load %arg0[%c0_5, %c0_6] : memref<128x16xf32, #tpu.memory_space<vmem>>, vector<40x16xf32>
    %c0_7 = arith.constant 0 : index
    %c0_8 = arith.constant 0 : index
    %7 = vector.load %arg1[%c0_7, %c0_8] : memref<16x8xf32, #tpu.memory_space<vmem>>, vector<16x8xf32>
    %cst_9 = arith.constant dense<0.000000e+00> : vector<40x8xf32>
    %8 = tpu.matmul %6, %7, %cst_9 {dimension_numbers = #tpu.dot_dimension_numbers<[1], [0], [0], [1], [0, 0, 1, 1], [], []>} : vector<40x16xf32>, vector<16x8xf32>, vector<40x8xf32> -> vector<40x8xf32>
    %c0_10 = arith.constant 0 : index
    %c0_11 = arith.constant 0 : index
    %9 = vector.load %arg2[%c0_10, %c0_11] : memref<1x8xf32, #tpu.memory_space<vmem>>, vector<1x8xf32>
    %10 = vector.broadcast %9 : vector<1x8xf32> to vector<40x8xf32>
    %11 = arith.addf %8, %10 : vector<40x8xf32>
    %cst_12 = arith.constant dense<0.000000e+00> : vector<40x128xf32>
    %12 = tpu.matmul %11, %5, %cst_12 {dimension_numbers = #tpu.dot_dimension_numbers<[1], [1], [0], [0], [0, 0, 1, 0], [], []>} : vector<40x8xf32>, vector<128x8xf32>, vector<40x128xf32> -> vector<40x128xf32>
    %13 = math.exp %12 : vector<40x128xf32>
    %c0_13 = arith.constant 0 : index
    %c0_14 = arith.constant 0 : index
    %14 = vector.load %arg5[%c0_13, %c0_14] : memref<40x128xbf16, #tpu.memory_space<vmem>>, vector<40x128xbf16>
    %15 = arith.extf %14 : vector<40x128xbf16> to vector<40x128xf32>
    %16 = arith.mulf %13, %15 : vector<40x128xf32>
    %cst_15 = arith.constant dense<0.000000e+00> : vector<40xf32>
    %17 = vector.multi_reduction <add>, %16, %cst_15 [1] : vector<40x128xf32> to vector<40xf32>
    %18 = vector.shape_cast %17 : vector<40xf32> to vector<40x1xf32>
    %cst_16 = arith.constant 0.000000e+00 : f32
    %19 = vector.broadcast %cst_16 : f32 to vector<40x1xf32>
    %20 = arith.cmpf oeq, %18, %19 : vector<40x1xf32>
    %cst_17 = arith.constant 1.000000e+00 : f32
    %21 = vector.broadcast %cst_17 : f32 to vector<40x1xf32>
    %22 = arith.select %20, %21, %18 : vector<40x1xi1>, vector<40x1xf32>
    %23 = tpu.reciprocal %22 : vector<40x1xf32> -> vector<40x1xf32>
    %24 = vector.broadcast %23 : vector<40x1xf32> to vector<40x128xf32>
    %25 = arith.mulf %16, %24 : vector<40x128xf32>
    %c0_18 = arith.constant 0 : index
    %c0_19 = arith.constant 0 : index
    %26 = vector.load %arg6[%c0_18, %c0_19] : memref<40x128xf32, #tpu.memory_space<vmem>>, vector<40x128xf32>
    tpu.vector_store %arg6[%c0_18, %c0_19], %25 {strides = array<i32>} : memref<40x128xf32, #tpu.memory_space<vmem>>, vector<40x128xf32>,
    return
  }
}

</mosaic_0001>

<bundles_post_ra>
// kernel: graph_attention_padded.1
= control target key start
LH: loop header
LB: loop body
LE: loop exit
PB: predicated region body
PF: predicated region fallthrough
CT: control target
= control target key end

     0   :  { %vm49_vm0 = vcmask 130048   ;;  %v864_v4 = vmov 0.0   ;;  %vm865_vm1 = vmmov 0   ;;  %s1145_s0 = inlined_call_operand.vmem [shape: f32[128,16], index: 0, kind: input, shape index: {}]   ;;  %s1146_s1 = inlined_call_operand.vmem [shape: f32[16,8], index: 1, kind: input, shape index: {}]   ;;  %s1147_s2 = inlined_call_operand.vmem [shape: f32[1,8], index: 2, kind: input, shape index: {}]   ;;  %s1148_s3 = inlined_call_operand.vmem [shape: f32[16,8], index: 3, kind: input, shape index: {}]   ;;  %s1149_s4 = inlined_call_operand.vmem [shape: f32[1,8], index: 4, kind: input, shape index: {}]   ;;  %s1150_s5 = inlined_call_operand.vmem [shape: bf16[40,128], index: 5, kind: input, shape index: {}]   ;;  %s1151_s6 = inlined_call_operand.hbm [shape: f32[40,128], index: 6, kind: output, shape index: {}]  }
   0x1   :  { %v41_v0 = vld [vmem:[%s1148_s3 + $0x8] sm:$0xff]  ;;  %v40_v1 = vld [vmem:[%s1148_s3] sm:$0xff]  ;;  %719 = vmatprep.subr.mxu1 %v864_v4  ;;  %v26_v5 = vld [vmem:[%s1145_s0 + $0x10] sm:$0xff]  ;;  %723 = vmatprep.mubr.msk.f32.mxu1 %vm865_vm1, %v864_v4 }
   0x2   :  { %v24_v2 = vld [vmem:[%s1145_s0] sm:$0xff]  ;;  %691 = vmatprep.subr.mxu0 %v41_v0  ;;  %v25_v3 = vld [vmem:[%s1145_s0 + $0x8] sm:$0xff]  ;;  %v27_v6 = vld [vmem:[%s1145_s0 + $0x18] sm:$0xff] }
   0x3   :  { %695 = vmatprep.mubr.msk.f32.mxu0 %vm49_vm0, %v24_v2  ;;  %692 = vmatpush3.msra.mxu0 %v41_v0  ;;  %v249_v7 = vld [vmem:[%s1146_s1 + $0x8] sm:$0xff]  ;;  %v248_v8 = vld [vmem:[%s1146_s1] sm:$0xff] }
   0x4   :  { %693 = vmatprep.subr.mxu0 %v40_v1 }
   0x5   :  { %694 = vmatpush3.msra.mxu0 %v40_v1 }
   0x6   :  { %696 = vmatmul.mubr.msk.f32.vlgmr.msra.gmra.mxu0 %vm49_vm0, %v25_v3  ;;  %738 = vmatprep.subr.mxu0 %v864_v4 }
   0x7   :  { %698 = vmatprep.mubr.msk.f32.mxu0 %vm49_vm0, %v26_v5 }
   0x8   :  { %11 = vsyncpa [#allocation3], 0  ;;  %v28_v9 = vld [vmem:[%s1145_s0 + $0x20] sm:$0xff]  ;;  %720 = vmatpush3.msra.mxu1 %v249_v7  ;;  %v29_v10 = vld [vmem:[%s1145_s0 + $0x28] sm:$0xff]  ;;  %vm362_vm2 = vcmask 64512  }
   0x9   :  { %721 = vmatprep.subr.mxu1 %v864_v4  ;;  %v30_v11 = vld [vmem:[%s1145_s0 + $0x30] sm:$0xff]  ;;  %v31_v12 = vld [vmem:[%s1145_s0 + $0x38] sm:$0xff]  ;;  %v32_v13 = vld [vmem:[%s1145_s0 + $0x40] sm:$0xff] }
   0xa   :  { %699 = vmatmul.mubr.msk.f32.gmra.mxu0 %vm49_vm0, %v27_v6  ;;  %722 = vmatpush3.msra.mxu1 %v248_v8  ;;  %v33_v14 = vld [vmem:[%s1145_s0 + $0x48] sm:$0xff]  ;;  %v34_v15 = vld [vmem:[%s1145_s0 + $0x50] sm:$0xff]  ;;  %v35_v16 = vld [vmem:[%s1145_s0 + $0x58] sm:$0xff] }
   0xb   :  { %701 = vmatprep.mubr.msk.f32.mxu0 %vm49_vm0, %v28_v9  ;;  %724 = vmatmul.mubr.msk.f32.vlgmr.msra.gmra.mxu1 %vm49_vm0, %v24_v2  ;;  %v36_v17 = vld [vmem:[%s1145_s0 + $0x60] sm:$0xff]  ;;  %v37_v18 = vld [vmem:[%s1145_s0 + $0x68] sm:$0xff]  ;;  %v38_v19 = vld [vmem:[%s1145_s0 + $0x70] sm:$0xff] }
   0xc   :  { %726 = vmatprep.mubr.msk.f32.mxu1 %vm865_vm1, %v864_v4  ;;  %785 = vmatprep.subr.mxu1 %v864_v4  ;;  %v39_v20 = vld [vmem:[%s1145_s0 + $0x78] sm:$0xff]  ;;  %v1028_v45 = vld [vmem:[%s1149_s4] ss:$0 sm:$0xff] }
   0xd   :  { %v609_v0 = vld [vmem:[%s1147_s2] ss:$0 sm:$0xff] }
   0xe   :  { %702 = vmatmul.mubr.msk.f32.gmra.mxu0 %vm49_vm0, %v29_v10 }
   0xf   :  { %704 = vmatprep.mubr.msk.f32.mxu0 %vm49_vm0, %v30_v11  ;;  %727 = vmatmul.mubr.msk.f32.gmra.mxu1 %vm49_vm0, %v25_v3 }
  0x10   :  { %729 = vmatprep.mubr.msk.f32.mxu1 %vm865_vm1, %v864_v4 }
  0x12   :  { %705 = vmatmul.mubr.msk.f32.gmra.mxu0 %vm49_vm0, %v31_v12 }
  0x13   :  { %707 = vmatprep.mubr.msk.f32.mxu0 %vm49_vm0, %v32_v13  ;;  %730 = vmatmul.mubr.msk.f32.gmra.mxu1 %vm49_vm0, %v26_v5 }
  0x14   :  { %732 = vmatprep.mubr.msk.f32.mxu1 %vm865_vm1, %v864_v4 }
  0x16   :  { %708 = vmatmul.mubr.msk.f32.gmra.mxu0 %vm49_vm0, %v33_v14 }
  0x17   :  { %710 = vmatprep.mubr.msk.f32.mxu0 %vm49_vm0, %v34_v15  ;;  %733 = vmatmul.mubr.msk.f32.gmra.mxu1 %vm49_vm0, %v27_v6 }
  0x18   :  { %735 = vmatprep.mubr.msk.f32.mxu1 %vm865_vm1, %v864_v4 }
  0x1a   :  { %711 = vmatmul.mubr.msk.f32.gmra.mxu0 %vm49_vm0, %v35_v16 }
  0x1b   :  { %713 = vmatprep.mubr.msk.f32.mxu0 %vm49_vm0, %v36_v17  ;;  %736 = vmatmul.mubr.msk.f32.gmra.mxu1 %vm49_vm0, %v28_v9 }
  0x1c   :  { %779 = vmatprep.mubr.msk.f32.mxu1 %vm865_vm1, %v864_v4 }
  0x1e   :  { %714 = vmatmul.mubr.msk.f32.gmra.mxu0 %vm49_vm0, %v37_v18 }
  0x1f   :  { %716 = vmatprep.mubr.msk.f32.mxu0 %vm49_vm0, %v38_v19 }
  0x22   :  { %717 = vmatmul.mubr.msk.f32.gmra.mxu0 %vm49_vm0, %v39_v20 }
  0x23   :  { %770 = vmatprep.mubr.msk.f32.mxu0 %vm865_vm1, %v864_v4 }
  0xc6   :  { %v1003_v21 = vpop.f32.mrf.mxu0 }
  0xc7   :  { %v170_v62 = vadd.f32 %v1003_v21, %v1028_v45  ;;  %v637_v21 = vld [vmem:[%s1150_s5] sm:$0xff]  }
  0xc8   :  { %v1005_v22 = vpop.f32.mrf.mxu0 }
  0xc9   :  { %v165_v63 = vadd.f32 %v1028_v45, %v1005_v22  ;;  %v638_v22 = vunpack.c.l.bf16 %v637_v21 }
  0xca   :  { %v1007_v23 = vpop.f32.mrf.mxu0 }
  0xcb   :  { %v1009_v24 = vpop.f32.mrf.mxu1  ;;  %v180_v60 = vadd.f32 %v1007_v23, %v1028_v45 }
  0xcc   :  { %v1011_v25 = vpop.f32.mrf.mxu0  ;;  %v339_v2 = vadd.f32 %v609_v0, %v1009_v24  ;;  %v530_v24 = vld [vmem:[%s1150_s5 + $0x10] sm:$0xf] }
  0xcd   :  { %v725_v26 = vpop.f32.mrf.mxu1  ;;  %v175_v61 = vadd.f32 %v1028_v45, %v1011_v25 }
  0xce   :  { %v1013_v27 = vpop.f32.mrf.mxu0  ;;  %v639_v26 = vunpack.c.h.bf16 %v637_v21 }
  0xcf   :  { %v1015_v28 = vpop.f32.mrf.mxu1  ;;  %v190_v58 = vadd.f32 %v1013_v27, %v1028_v45  ;;  %v644_v27 = vld [vmem:[%s1150_s5 + $0x8] sm:$0xff]   ;;  %s866_s5 = smov [#allocation2]  }
  0xd0   :  { %v1017_v29 = vpop.f32.mrf.mxu0  ;;  %v344_v5 = vadd.f32 %v609_v0, %v1015_v28  ;;  %v535_v28 = vunpack.c.l.bf16 %v530_v24  ;;  %s581_s16 = sshll.u32 %s866_s5, 4  ;;  %s582_s16 = int_to_ptr.vmem [resolvable:$true] %s581_s16 }
  0xd1   :  { %v728_v30 = vpop.f32.mrf.mxu1  ;;  %v185_v59 = vadd.f32 %v1028_v45, %v1017_v29  ;;  %s842_s17 = scalar_lea.vmem %s582_s16, 640  ;;  %p847_p1 = scmp.lt.s32.totalorder %s582_s16, %s582_s16 }
  0xd2   :  { %v706_v31 = vpop.f32.mrf.mxu0  ;;  %p843_p0 = scmp.ne.s32.totalorder %s582_s16, %s842_s17  ;;  %p848_p2 = scmp.lt.s32.totalorder %s842_s17, %s842_s17 }
  0xd3   :  { %v1019_v32 = vpop.f32.mrf.mxu1  ;;  %v200_v56 = vadd.f32 %v706_v31, %v1028_v45 }
  0xd4   :  { %v194_v33 = vpop.f32.mrf.mxu0  ;;  %v349_v6 = vadd.f32 %v609_v0, %v1019_v32  ;;  %v642_v32 = vunpack.c.l.bf16 %v644_v27  ;;  %p849_p3 = por %p848_p2, %p847_p1 }
  0xd5   :  { %v731_v34 = vpop.f32.mrf.mxu1  ;;  %v195_v57 = vadd.f32 %v1028_v45, %v194_v33 }
  0xd6   :  { %v709_v35 = vpop.f32.mrf.mxu0  ;;  %p850_p4 = pnand %p849_p3, %p843_p0 }
  0xd7   :  { %v1021_v36 = vpop.f32.mrf.mxu1  ;;  %v210_v54 = vadd.f32 %v709_v35, %v1028_v45 }
  0xd8   :  { %v204_v37 = vpop.f32.mrf.mxu0  ;;  %v354_v1 = vadd.f32 %v609_v0, %v1021_v36  ;;  %v643_v36 = vunpack.c.h.bf16 %v644_v27 }
  0xd9   :  { %v734_v38 = vpop.f32.mrf.mxu1  ;;  %v205_v55 = vadd.f32 %v1028_v45, %v204_v37 }
  0xda   :  { %v712_v39 = vpop.f32.mrf.mxu0 }
  0xdb   :  { %v1023_v40 = vpop.f32.mrf.mxu1  ;;  %v220_v52 = vadd.f32 %v712_v39, %v1028_v45 }
  0xdc   :  { %v214_v41 = vpop.f32.mrf.mxu0  ;;  %v359_v3 = vadd.f32 %v609_v0, %v1023_v40 }
  0xdd   :  { %v737_v42 = vpop.f32.mrf.mxu1  ;;  %v215_v53 = vadd.f32 %v1028_v45, %v214_v41 }
  0xde   :  { %v715_v43 = vpop.f32.mrf.mxu0 }
  0xdf   :  { %v230_v50 = vadd.f32 %v715_v43, %v1028_v45 }
  0xe0   :  { %v224_v44 = vpop.f32.mrf.mxu0 }
  0xe1   :  { %v225_v51 = vadd.f32 %v1028_v45, %v224_v44 }
  0xe2   :  { %v718_v46 = vpop.f32.mrf.mxu0 }
  0xe3   :  { %v240_v47 = vadd.f32 %v718_v46, %v1028_v45 }
  0xe4   :  { %v234_v48 = vpop.f32.mrf.mxu0 }
  0xe5   :  { %739 = vmatpush3.xpose.msk.msra.mxu0 %vm362_vm2, %v240_v47  ;;  %801 = vmatpush3.xpose.msk.msra.mxu1 %vm362_vm2, %v240_v47  ;;  %v235_v49 = vadd.f32 %v1028_v45, %v234_v48 }
  0xe6   :  { %740 = vmatprep.subr.mxu0 %v864_v4  ;;  %786 = vmatprep.subr.mxu1 %v864_v4 }
  0xe9   :  { %741 = vmatpush3.xpose.msk.msra.mxu0 %vm362_vm2, %v235_v49  ;;  %802 = vmatpush3.xpose.msk.msra.mxu1 %vm362_vm2, %v235_v49 }
  0xea   :  { %742 = vmatprep.subr.mxu0 %v864_v4  ;;  %787 = vmatprep.subr.mxu1 %v864_v4 }
  0xed   :  { %743 = vmatpush3.xpose.msk.msra.mxu0 %vm362_vm2, %v230_v50  ;;  %803 = vmatpush3.xpose.msk.msra.mxu1 %vm362_vm2, %v230_v50 }
  0xee   :  { %744 = vmatprep.subr.mxu0 %v864_v4  ;;  %788 = vmatprep.subr.mxu1 %v864_v4 }
  0xf1   :  { %745 = vmatpush3.xpose.msk.msra.mxu0 %vm362_vm2, %v225_v51  ;;  %804 = vmatpush3.xpose.msk.msra.mxu1 %vm362_vm2, %v225_v51 }
  0xf2   :  { %746 = vmatprep.subr.mxu0 %v864_v4  ;;  %789 = vmatprep.subr.mxu1 %v864_v4 }
  0xf5   :  { %747 = vmatpush3.xpose.msk.msra.mxu0 %vm362_vm2, %v220_v52  ;;  %805 = vmatpush3.xpose.msk.msra.mxu1 %vm362_vm2, %v220_v52 }
  0xf6   :  { %748 = vmatprep.subr.mxu0 %v864_v4  ;;  %790 = vmatprep.subr.mxu1 %v864_v4 }
  0xf9   :  { %749 = vmatpush3.xpose.msk.msra.mxu0 %vm362_vm2, %v215_v53  ;;  %806 = vmatpush3.xpose.msk.msra.mxu1 %vm362_vm2, %v215_v53 }
  0xfa   :  { %750 = vmatprep.subr.mxu0 %v864_v4  ;;  %791 = vmatprep.subr.mxu1 %v864_v4 }
  0xfd   :  { %751 = vmatpush3.xpose.msk.msra.mxu0 %vm362_vm2, %v210_v54  ;;  %807 = vmatpush3.xpose.msk.msra.mxu1 %vm362_vm2, %v210_v54 }
  0xfe   :  { %752 = vmatprep.subr.mxu0 %v864_v4  ;;  %792 = vmatprep.subr.mxu1 %v864_v4 }
 0x101   :  { %753 = vmatpush3.xpose.msk.msra.mxu0 %vm362_vm2, %v205_v55  ;;  %808 = vmatpush3.xpose.msk.msra.mxu1 %vm362_vm2, %v205_v55 }
 0x102   :  { %754 = vmatprep.subr.mxu0 %v864_v4  ;;  %793 = vmatprep.subr.mxu1 %v864_v4 }
 0x105   :  { %755 = vmatpush3.xpose.msk.msra.mxu0 %vm362_vm2, %v200_v56  ;;  %809 = vmatpush3.xpose.msk.msra.mxu1 %vm362_vm2, %v200_v56 }
 0x106   :  { %756 = vmatprep.subr.mxu0 %v864_v4  ;;  %794 = vmatprep.subr.mxu1 %v864_v4 }
 0x109   :  { %757 = vmatpush3.xpose.msk.msra.mxu0 %vm362_vm2, %v195_v57  ;;  %810 = vmatpush3.xpose.msk.msra.mxu1 %vm362_vm2, %v195_v57 }
 0x10a   :  { %758 = vmatprep.subr.mxu0 %v864_v4  ;;  %795 = vmatprep.subr.mxu1 %v864_v4 }
 0x10d   :  { %759 = vmatpush3.xpose.msk.msra.mxu0 %vm362_vm2, %v190_v58  ;;  %811 = vmatpush3.xpose.msk.msra.mxu1 %vm362_vm2, %v190_v58 }
 0x10e   :  { %760 = vmatprep.subr.mxu0 %v864_v4  ;;  %796 = vmatprep.subr.mxu1 %v864_v4 }
 0x111   :  { %761 = vmatpush3.xpose.msk.msra.mxu0 %vm362_vm2, %v185_v59  ;;  %812 = vmatpush3.xpose.msk.msra.mxu1 %vm362_vm2, %v185_v59 }
 0x112   :  { %762 = vmatprep.subr.mxu0 %v864_v4  ;;  %797 = vmatprep.subr.mxu1 %v864_v4 }
 0x115   :  { %763 = vmatpush3.xpose.msk.msra.mxu0 %vm362_vm2, %v180_v60  ;;  %813 = vmatpush3.xpose.msk.msra.mxu1 %vm362_vm2, %v180_v60 }
 0x116   :  { %764 = vmatprep.subr.mxu0 %v864_v4  ;;  %798 = vmatprep.subr.mxu1 %v864_v4 }
 0x119   :  { %765 = vmatpush3.xpose.msk.msra.mxu0 %vm362_vm2, %v175_v61  ;;  %814 = vmatpush3.xpose.msk.msra.mxu1 %vm362_vm2, %v175_v61 }
 0x11a   :  { %766 = vmatprep.subr.mxu0 %v864_v4  ;;  %799 = vmatprep.subr.mxu1 %v864_v4 }
 0x11d   :  { %767 = vmatpush3.xpose.msk.msra.mxu0 %vm362_vm2, %v170_v62  ;;  %815 = vmatpush3.xpose.msk.msra.mxu1 %vm362_vm2, %v170_v62 }
 0x11e   :  { %768 = vmatprep.subr.mxu0 %v864_v4  ;;  %800 = vmatprep.subr.mxu1 %v864_v4 }
 0x121   :  { %769 = vmatpush3.xpose.msk.msra.mxu0 %vm362_vm2, %v165_v63  ;;  %816 = vmatpush3.xpose.msk.msra.mxu1 %vm362_vm2, %v165_v63 }
 0x124   :  { %771 = vmatmul.mubr.msk.f32.vlgmr.msra.gmra.mxu0 %vm362_vm2, %v339_v2  ;;  %780 = vmatmul.mubr.msk.f32.vlgmr.msra.gmra.mxu1 %vm362_vm2, %v354_v1 }
 0x125   :  { %773 = vmatprep.mubr.msk.f32.mxu0 %vm865_vm1, %v864_v4  ;;  %782 = vmatprep.mubr.msk.f32.mxu1 %vm865_vm1, %v864_v4 }
 0x128   :  { %774 = vmatmul.mubr.msk.f32.gmra.mxu0 %vm362_vm2, %v344_v5  ;;  %783 = vmatmul.mubr.msk.f32.gmra.mxu1 %vm362_vm2, %v359_v3 }
 0x129   :  { %776 = vmatprep.mubr.msk.f32.mxu0 %vm865_vm1, %v864_v4 }
 0x12c   :  { %777 = vmatmul.mubr.msk.f32.gmra.mxu0 %vm362_vm2, %v349_v6 }
 0x1e4   :  { %v492_v7 = vpop.f32.mrf.mxu0  ;;  %v507_v8 = vpop.f32.mrf.mxu1 }
 0x1e5   :  { %v516_v9 = vmul.f32 1.442695, %v492_v7  ;;  %v522_v4 = vmul.f32 1.442695, %v507_v8 }
 0x1e6   :  { %v772_v10 = vpop.f32.mrf.mxu0  ;;  %v781_v11 = vpop.f32.mrf.mxu1 }
 0x1e7   :  { %822 = vpow2.f32 %v516_v9 }
 0x1e8   :  { %v497_v12 = vpop.f32.mrf.mxu0  ;;  %v512_v13 = vpop.f32.mrf.mxu1 }
 0x1e9   :  { %v518_v14 = vmul.f32 1.442695, %v497_v12  ;;  %v524_v15 = vmul.f32 1.442695, %v512_v13 }
 0x1ea   :  { %v775_v16 = vpop.f32.mrf.mxu0  ;;  %v784_v17 = vpop.f32.mrf.mxu1 }
 0x1eb   :  { %824 = vpow2.f32 %v518_v14 }
 0x1ec   :  { %v502_v18 = vpop.f32.mrf.mxu0  ;;  %826 = vpow2.f32 %v524_v15 }
 0x1ed   :  { %v520_v19 = vmul.f32 1.442695, %v502_v18 }
 0x1ee   :  { %v778_v20 = vpop.f32.mrf.mxu0 }
 0x1ef   :  { %828 = vpow2.f32 %v520_v19 }
 0x1f0   :  { %830 = vpow2.f32 %v522_v4 }
 0x1f4   :  { %v823_v23 = vpop.eup %822 }
 0x1f5   :  { %v536_v25 = vmul.f32 %v823_v23, %v638_v22 }
 0x1f7   :  { %541 = vadd.xlane.f32.xlu0 %v536_v25 }
 0x1f8   :  { %v825_v29 = vpop.eup %824 }
 0x1f9   :  { %v827_v30 = vpop.eup %826  ;;  %v537_v31 = vmul.f32 %v825_v29, %v639_v26 }
 0x1fa   :  { %v540_v33 = vmul.f32 %v827_v30, %v535_v28 }
 0x1fb   :  { %543 = vadd.xlane.f32.xlu0 %v537_v31 }
 0x1fc   :  { %v829_v34 = vpop.eup %828 }
 0x1fd   :  { %v538_v35 = vmul.f32 %v829_v34, %v642_v32  ;;  %v831_v37 = vpop.eup %830 }
 0x1fe   :  { %v539_v38 = vmul.f32 %v831_v37, %v643_v36 }
 0x1ff   :  { %549 = vadd.xlane.f32.xlu0 %v540_v33  ;;  %545 = vadd.xlane.f32.xlu1 %v538_v35 }
 0x203   :  { %547 = vadd.xlane.f32.xlu1 %v539_v38 }
 0x280   :  { %v542_v39 = vpop.xlane.xlu0 %541 }
 0x281   :  { %vm551_vm3 = vcmp.eq.f32.partialorder %v542_v39, 0.0 }
 0x282   :  { %v556_v40 = vsel %vm551_vm3, 1.0, %v542_v39 }
 0x283   :  { %832 = vrcp.f32 %v556_v40 }
 0x284   :  { %v544_v41 = vpop.xlane.xlu0 %543 }
 0x285   :  { %vm552_vm4 = vcmp.eq.f32.partialorder %v544_v41, 0.0 }
 0x286   :  { %v557_v42 = vsel %vm552_vm4, 1.0, %v544_v41 }
 0x287   :  { %834 = vrcp.f32 %v557_v42 }
 0x288   :  { %v550_v43 = vpop.xlane.xlu0 %549  ;;  %v546_v44 = vpop.xlane.xlu1 %545 }
 0x289   :  { %vm555_vm5 = vcmp.eq.f32.partialorder %v550_v43, 0.0  ;;  %vm553_vm6 = vcmp.eq.f32.partialorder %v546_v44, 0.0 }
 0x28a   :  { %v560_v45 = vsel %vm555_vm5, 1.0, %v550_v43  ;;  %v558_v46 = vsel %vm553_vm6, 1.0, %v546_v44 }
 0x28b   :  { %836 = vrcp.f32 %v560_v45 }
 0x28c   :  { %838 = vrcp.f32 %v558_v46  ;;  %v548_v47 = vpop.xlane.xlu1 %547 }
 0x28d   :  { %vm554_vm7 = vcmp.eq.f32.partialorder %v548_v47, 0.0 }
 0x28e   :  { %v559_v48 = vsel %vm554_vm7, 1.0, %v548_v47 }
 0x28f   :  { %840 = vrcp.f32 %v559_v48 }
 0x290   :  { %v833_v49 = vpop.eup %832 }
 0x291   :  { %v566_v50 = vmul.f32 %v833_v49, %v536_v25 }
 0x293   :  { %571 = vst [vmem:[#allocation2] sm:$0xff] %v566_v50 }
 0x294   :  { %v835_v51 = vpop.eup %834 }
 0x295   :  { %v567_v52 = vmul.f32 %v835_v51, %v537_v31 }
 0x297   :  { %572 = vst [vmem:[#allocation2 + $0x8] sm:$0xff] %v567_v52 }
 0x298   :  { %v837_v53 = vpop.eup %836 }
 0x299   :  { %v839_v54 = vpop.eup %838  ;;  %v570_v55 = vmul.f32 %v837_v53, %v540_v33 }
 0x29a   :  { %v568_v56 = vmul.f32 %v839_v54, %v538_v35 }
 0x29b   :  { %575 = vst [vmem:[#allocation2 + $0x20] sm:$0xff] %v570_v55 }
 0x29c   :  { %v841_v57 = vpop.eup %840  ;;  %573 = vst [vmem:[#allocation2 + $0x10] sm:$0xff] %v568_v56 }
 0x29d   :  { %v569_v58 = vmul.f32 %v841_v57, %v539_v38 }
 0x29f   :  { %574 = vst [vmem:[#allocation2 + $0x18] sm:$0xff] %v569_v58 }
 0x2a0   :  { %853 = shalt.err (!%p850_p4)
}
 0x2a1   :  { %s867_s18 = smov 128   ;;  %s868_s19 = smov 8  }
 0x2a2   :  { %587 = dma.vmem_to_hbm [thread:$0]  %s582_s16, 640, %s1151_s6, [#allocation3], %s867_s18, %s867_s18, %s868_s19  }
 0x2a3   :  { %862 = dma.done.wait [#allocation3], 640  }
 0x2a4   :  { %863 = vsyncadd [#allocation3], 4294966656 }
 0x2a5   :  { %591 = vsyncpa [#allocation3], 1 }

</bundles_post_ra>
